<compile_context>
chip_gen: v7x
topology: tpu7x:2x2x1
jax: 0.10.0
libtpu: 0.0.40
codegen_flags: <defaults>
</compile_context>

<pallas_src>
import functools

import numpy as np
import jax
import jax.numpy as jnp
from jax.experimental import pallas as pl
from jax.experimental.pallas import tpu as pltpu


@functools.lru_cache(maxsize=None)
def _silu_normalization_constant() -> float:
    """e3nn normalize2mom constant for SiLU: 1 / sqrt(E_{z~N(0,1)}[silu(z)^2])."""
    z = np.linspace(-12.0, 12.0, 480001, dtype=np.float64)
    dz = z[1] - z[0]
    pdf = np.exp(-0.5 * z * z) / np.sqrt(2.0 * np.pi)
    silu = z / (1.0 + np.exp(-z))
    second_moment = float(np.sum(silu * silu * pdf) * dz)
    return float(1.0 / np.sqrt(second_moment))


def _round_up(v: int, m: int) -> int:
    return ((v + m - 1) // m) * m


def _nonlinear_readout_kernel(x_ref, w1_ref, w2_ref, out_ref):
    # linear_1: (TN, C_in) @ (C_in, H) on the MXU, f32 math / f32 accumulation.
    x = x_ref[...].astype(jnp.float32)
    h = jnp.dot(
        x, w1_ref[...],
        preferred_element_type=jnp.float32,
        precision=jax.lax.Precision.HIGHEST,
    )
    # e3nn Activation on 0e scalars: SiLU (normalize2mom cst folded into W2).
    h = h * jax.nn.sigmoid(h)
    # linear_2: (TN, H) @ (H, E_out) on the MXU.
    out_ref[...] = jnp.dot(
        h, w2_ref[...],
        preferred_element_type=jnp.float32,
        precision=jax.lax.Precision.HIGHEST,
    ).astype(out_ref.dtype)


def nonlinear_readout_block(
    x, w1, w2, *,
    hbm_tile_budget_bytes: int = 4 * 1024 * 1024,   # raw x bytes per grid step
    vmem_tile_cap_bytes: int = 24 * 1024 * 1024,    # padded, double-buffered cap
):
    """Fused NonLinearReadoutBlock forward (scalars-only path).

    x:  [N, C_in] node features (C_in x 0e); f32 or bf16, consumed as-is.
    w1: [C_in, H]  raw o3.Linear weight (irreps_in -> MLP_irreps)
    w2: [H, E_out] raw o3.Linear weight (MLP_irreps -> n_energies x 0e)
    returns [N, E_out] in x.dtype
    """
    N, C_in = x.shape
    H = w1.shape[1]
    E_out = w2.shape[1]
    out_dtype = x.dtype

    # Fold o3.Linear path norm and the normalize2mom gate constant into the
    # tiny weight tensors once (act_cst folded into W2 by linearity).
    act_cst = _silu_normalization_constant()
    w1n = w1.astype(jnp.float32) * np.float32(1.0 / np.sqrt(C_in))
    w2n = w2.astype(jnp.float32) * np.float32(act_cst / np.sqrt(H))

    x_isz = jnp.dtype(x.dtype).itemsize
    o_isz = jnp.dtype(out_dtype).itemsize
    # Sublane multiple for the node axis (8 for f32, 16 for bf16, ...).
    sub = max(8, 32 // max(1, min(x_isz, o_isz)))

    # (a) HBM-byte budget -> rows per step (amortize ~0.35us/step overhead).
    tn_hbm = max(sub, hbm_tile_budget_bytes // max(1, C_in * x_isz))

    # (b) VMEM capacity: double-buffered x/out tiles with lane padding to 128,
    #     plus double-buffered weight blocks; must fit every generation's
    #     scoped VMEM once vmem_limit_bytes is raised to <= 32 MiB.
    pad_cin = _round_up(C_in, 128)
    pad_eout = _round_up(E_out, 128)
    per_row_vmem = 2 * pad_cin * x_isz + 2 * pad_eout * o_isz
    w_vmem = 2 * (
        _round_up(C_in, 8) * _round_up(H, 128)
        + _round_up(H, 8) * _round_up(E_out, 128)
    ) * 4
    tn_vmem = max(sub, (vmem_tile_cap_bytes - w_vmem) // max(1, per_row_vmem))

    # (c) >= 2 grid steps so both v7x TensorCores get work (1-TC chips lose
    #     only one extra ~0.35us step); never exceed the padded node count.
    tn_2core = _round_up(pl.cdiv(N, 2), sub)
    tn_full = _round_up(N, sub)

    tn = min(tn_hbm, tn_vmem, tn_2core, tn_full)
    tn = max(sub, (tn // sub) * sub)
    grid = (pl.cdiv(N, tn),)

    vmem_need = tn * per_row_vmem + w_vmem
    vmem_limit = int(min(max(vmem_need + (4 << 20), 16 << 20), 32 << 20))

    return pl.pallas_call(
        _nonlinear_readout_kernel,
        out_shape=jax.ShapeDtypeStruct((N, E_out), out_dtype),
        grid_spec=pltpu.PrefetchScalarGridSpec(
            num_scalar_prefetch=0,
            grid=grid,
            in_specs=[
                pl.BlockSpec((tn, C_in), lambda i: (i, 0)),   # node-feature tile
                pl.BlockSpec((C_in, H), lambda i: (0, 0)),    # W1 (full block)
                pl.BlockSpec((H, E_out), lambda i: (0, 0)),   # W2 (full block)
            ],
            out_specs=pl.BlockSpec((tn, E_out), lambda i: (i, 0)),
        ),
        compiler_params=pltpu.CompilerParams(
            dimension_semantics=("parallel",),   # node axis shards across TCs
            vmem_limit_bytes=vmem_limit,
        ),
    )(x, w1n, w2n)


def _reference(x, w1, w2):
    """Pure-JAX reference mirroring the PyTorch module (scalars-only path)."""
    C_in = x.shape[1]
    H = w1.shape[1]
    act_cst = _silu_normalization_constant()
    xf = x.astype(jnp.float32)
    h = jnp.dot(xf, w1.astype(jnp.float32) / np.float32(np.sqrt(C_in)),
                precision=jax.lax.Precision.HIGHEST)
    h = np.float32(act_cst) * jax.nn.silu(h)
    return jnp.dot(h, w2.astype(jnp.float32) / np.float32(np.sqrt(H)),
                   precision=jax.lax.Precision.HIGHEST)


if __name__ == "__main__":
    key = jax.random.PRNGKey(0)
    kx, k1, k2, kb = jax.random.split(key, 4)

    # Small, module-consistent shapes:
    num_nodes = 8      # N (nodes in the graph batch)
    c_in = 32          # irreps_in  = 32x0e
    hidden = 16        # MLP_irreps = 16x0e
    n_energies = 2     # linear_2 out = 2x0e   (compute_nacs = False)

    x = jax.random.normal(kx, (num_nodes, c_in), dtype=jnp.float32)
    w1 = jax.random.normal(k1, (c_in, hidden), dtype=jnp.float32)
    w2 = jax.random.normal(k2, (hidden, n_energies), dtype=jnp.float32)

    out = jax.block_until_ready(nonlinear_readout_block(x, w1, w2))
    ref = _reference(x, w1, w2)
    assert out.shape == (num_nodes, n_energies)
    assert out.dtype == x.dtype
    assert jnp.allclose(out, ref, atol=1e-4, rtol=1e-4), "mismatch vs ref (f32)"

    # bf16 node features are consumed natively (halves x DMA bytes); math f32.
    xb = jax.random.normal(kb, (16, c_in), dtype=jnp.bfloat16)
    outb = jax.block_until_ready(nonlinear_readout_block(xb, w1, w2))
    refb = _reference(xb, w1, w2)
    assert outb.dtype == jnp.bfloat16
    assert jnp.allclose(outb.astype(jnp.float32), refb,
                        atol=5e-2, rtol=5e-2), "mismatch vs ref (bf16)"

    print("KERNEL_OK")
</pallas_src>

<mosaic_0001>
module attributes {stable_mosaic.version = 11 : i64} {
  func.func @_nonlinear_readout_kernel(%arg0: i32, %arg1: memref<8x32xf32, #tpu.memory_space<vmem>>, %arg2: memref<32x16xf32, #tpu.memory_space<vmem>>, %arg3: memref<16x2xf32, #tpu.memory_space<vmem>>, %arg4: memref<8x2xf32, #tpu.memory_space<vmem>>) attributes {dimension_semantics = [#tpu.dimension_semantics<parallel>], iteration_bounds = array<i64: 1>, scalar_prefetch = 0 : i64, scratch_operands = 0 : i64, tpu.core_type = #tpu.core_type<tc>, window_params = [{transform_indices = @transform_0, window_bounds = array<i64: 8, 32>}, {pipeline_mode = #tpu.pipeline_mode<synchronous>, transform_indices = @transform_1, window_bounds = array<i64: 32, 16>}, {pipeline_mode = #tpu.pipeline_mode<synchronous>, transform_indices = @transform_2, window_bounds = array<i64: 16, 2>}, {transform_indices = @transform_3, window_bounds = array<i64: 8, 2>}]} {
    %c0 = arith.constant 0 : index
    %c0_0 = arith.constant 0 : index
    %0 = vector.load %arg1[%c0, %c0_0] : memref<8x32xf32, #tpu.memory_space<vmem>>, vector<8x32xf32>
    %c0_1 = arith.constant 0 : index
    %c0_2 = arith.constant 0 : index
    %1 = vector.load %arg2[%c0_1, %c0_2] : memref<32x16xf32, #tpu.memory_space<vmem>>, vector<32x16xf32>
    %cst = arith.constant dense<0.000000e+00> : vector<8x16xf32>
    %2 = tpu.matmul %0, %1, %cst {dimension_numbers = #tpu.dot_dimension_numbers<[1], [0], [0], [1], [0, 0, 1, 1], [], []>, precision = #tpu.contract_precision<fp32>} : vector<8x32xf32>, vector<32x16xf32>, vector<8x16xf32> -> vector<8x16xf32>
    %3 = arith.negf %2 : vector<8x16xf32>
    %4 = math.exp %3 : vector<8x16xf32>
    %cst_3 = arith.constant 1.000000e+00 : f32
    %5 = vector.broadcast %cst_3 : f32 to vector<8x16xf32>
    %6 = arith.addf %5, %4 : vector<8x16xf32>
    %7 = arith.divf %5, %6 : vector<8x16xf32>
    %8 = arith.mulf %2, %7 : vector<8x16xf32>
    %c0_4 = arith.constant 0 : index
    %c0_5 = arith.constant 0 : index
    %9 = vector.load %arg3[%c0_4, %c0_5] : memref<16x2xf32, #tpu.memory_space<vmem>>, vector<16x2xf32>
    %cst_6 = arith.constant dense<0.000000e+00> : vector<8x2xf32>
    %10 = tpu.matmul %8, %9, %cst_6 {dimension_numbers = #tpu.dot_dimension_numbers<[1], [0], [0], [1], [0, 0, 1, 1], [], []>, precision = #tpu.contract_precision<fp32>} : vector<8x16xf32>, vector<16x2xf32>, vector<8x2xf32> -> vector<8x2xf32>
    %c0_7 = arith.constant 0 : index
    %c0_8 = arith.constant 0 : index
    %11 = vector.load %arg4[%c0_7, %c0_8] : memref<8x2xf32, #tpu.memory_space<vmem>>, vector<8x2xf32>
    tpu.vector_store %arg4[%c0_7, %c0_8], %10 {strides = array<i32>} : memref<8x2xf32, #tpu.memory_space<vmem>>, vector<8x2xf32>,
    return
  }
  func.func @transform_0(%arg0: i32) -> (i32, i32) {
    %c0_i32 = arith.constant 0 : i32
    %c0_i32_0 = arith.constant 0 : i32
    return %arg0, %c0_i32 : i32, i32
  }
  func.func @transform_1(%arg0: i32) -> (i32, i32) {
    %c0_i32 = arith.constant 0 : i32
    %c0_i32_0 = arith.constant 0 : i32
    %c0_i32_1 = arith.constant 0 : i32
    return %c0_i32, %c0_i32_0 : i32, i32
  }
  func.func @transform_2(%arg0: i32) -> (i32, i32) {
    %c0_i32 = arith.constant 0 : i32
    %c0_i32_0 = arith.constant 0 : i32
    %c0_i32_1 = arith.constant 0 : i32
    return %c0_i32, %c0_i32_0 : i32, i32
  }
  func.func @transform_3(%arg0: i32) -> (i32, i32) {
    %c0_i32 = arith.constant 0 : i32
    %c0_i32_0 = arith.constant 0 : i32
    return %arg0, %c0_i32 : i32, i32
  }
}

</mosaic_0001>

<bundles_post_ra>
// kernel: tpu_custom_call.1
= control target key start
LH: loop header
LB: loop body
LE: loop exit
PB: predicated region body
PF: predicated region fallthrough
CT: control target
= control target key end

     0   :  { %vm19_vm0 = vcmask 261120   ;;  %v1223_v0 = vmov 0.0|0.0   ;;  %vm1224_vm1 = vmmov 0   ;;  %v1225_v4 = vmov 0.0   ;;  %s1313_s1 = inlined_call_operand.vmem [shape: f32[32,16], index: 1, kind: input, shape index: {}]   ;;  %s1314_s0 = inlined_call_operand.vmem [shape: f32[8,32], index: 0, kind: input, shape index: {}]   ;;  %s1315_s2 = inlined_call_operand.vmem [shape: f32[16,2], index: 2, kind: input, shape index: {}]   ;;  %s1316_s3 = inlined_call_operand.vmem [shape: f32[8,2], index: 3, kind: output, shape index: {}]  }
   0x1   :  { %1149 = vmatprep.subr.bf16.mxu0 %v1223_v0  ;;  %v15_v1 = vld [vmem:[%s1313_s1] sm:$0xff]  ;;  %v16_v2 = vld [vmem:[%s1313_s1 + $0x8] sm:$0xff]  ;;  %v17_v3 = vld [vmem:[%s1313_s1 + $0x10] sm:$0xff]  ;;  %1054 = vmatprep.mubr.msk.f32.mxu0 %vm1224_vm1, %v1225_v4  ;;  %vm517_vm2 = vcmask 130048   ;;  %vm980_vm3 = vcmask 15360  }
   0x2   :  { %v24_v5 = vand.u32 4294901760, %v15_v1  ;;  %v27_v6 = vand.u32 4294901760, %v16_v2  ;;  %v18_v7 = vld [vmem:[%s1313_s1 + $0x18] sm:$0xff]  ;;  %v30_v8 = vand.u32 4294901760, %v17_v3  ;;  %v14_v9 = vld [vmem:[%s1314_s0] sm:$0xff]  ;;  %1143 = vmatprep.subr.bf16.mxu1 %v1223_v0  ;;  %1043 = vmatprep.mubr.msk.f32.mxu1 %vm1224_vm1, %v1225_v4  ;;  %v516_v42 = vld [vmem:[%s1315_s2 + $0x8] sm:$0xff] }
   0x3   :  { %v33_v10 = vand.u32 4294901760, %v18_v7  ;;  %v21_v11 = vsel %vm19_vm0, %v14_v9, 0  ;;  %v515_v41 = vld [vmem:[%s1315_s2] sm:$0xff]  ;;  %v525_v44 = vand.u32 4294901760, %v516_v42 }
   0x4   :  { %v104_v12 = vsub.f32 %v15_v1, %v24_v5  ;;  %v111_v13 = vsub.f32 %v16_v2, %v27_v6  ;;  %v118_v14 = vsub.f32 %v17_v3, %v30_v8  ;;  %v92_v16 = vand.u32 4294901760, %v21_v11 }
   0x5   :  { %v125_v15 = vsub.f32 %v18_v7, %v33_v10  ;;  %v1144_v17 = vpack.c.bf16 %v27_v6, %v24_v5  ;;  %v1147_v27 = vpack.c.bf16 %v33_v10, %v30_v8  ;;  %v522_v43 = vand.u32 4294901760, %v515_v41 }
   0x6   :  { %v105_v18 = vand.u32 4294901760, %v104_v12  ;;  %v112_v19 = vand.u32 4294901760, %v111_v13  ;;  %v119_v20 = vand.u32 4294901760, %v118_v14  ;;  %v93_v22 = vsub.f32 %v21_v11, %v92_v16 }
   0x7   :  { %v126_v21 = vand.u32 4294901760, %v125_v15  ;;  %1145 = vmatpush3.bf16.msra.mxu1 %v1144_v17  ;;  %v1156_v37 = vpack.c.bf16 %v111_v13, %v104_v12  ;;  %v1159_v38 = vpack.c.bf16 %v125_v15, %v118_v14  ;;  %v1180_v45 = vpack.c.bf16 %v525_v44, %v522_v43 }
   0x8   :  { %v106_v23 = vsub.f32 %v104_v12, %v105_v18  ;;  %v113_v24 = vsub.f32 %v111_v13, %v112_v19  ;;  %v120_v25 = vsub.f32 %v118_v14, %v119_v20  ;;  %1146 = vmatprep.subr.bf16.mxu1 %v1223_v0  ;;  %v94_v28 = vand.u32 4294901760, %v93_v22 }
   0x9   :  { %v127_v26 = vsub.f32 %v125_v15, %v126_v21  ;;  %v1168_v39 = vpack.c.bf16 %v112_v19, %v105_v18  ;;  %v1171_v40 = vpack.c.bf16 %v126_v21, %v119_v20  ;;  %v600_v46 = vsub.f32 %v515_v41, %v522_v43 }
   0xa   :  { %v107_v29 = vand.u32 4294901760, %v106_v23  ;;  %v114_v30 = vand.u32 4294901760, %v113_v24  ;;  %v121_v31 = vand.u32 4294901760, %v120_v25  ;;  %v95_v33 = vsub.f32 %v93_v22, %v94_v28 }
   0xb   :  { %v128_v32 = vand.u32 4294901760, %v127_v26  ;;  %1148 = vmatpush3.bf16.msra.mxu1 %v1147_v27  ;;  %v607_v47 = vsub.f32 %v516_v42, %v525_v44  ;;  %v601_v48 = vand.u32 4294901760, %v600_v46 }
   0xc   :  { %v1150_v34 = vpack.c.bf16 %v114_v30, %v107_v29  ;;  %1179 = vmatprep.subr.bf16.mxu1 %v1223_v0  ;;  %v96_v35 = vand.u32 4294901760, %v95_v33 }
   0xd   :  { %v1153_v36 = vpack.c.bf16 %v128_v32, %v121_v31  ;;  %v608_v49 = vand.u32 4294901760, %v607_v47  ;;  %v602_v50 = vsub.f32 %v600_v46, %v601_v48  ;;  %v1186_v55 = vpack.c.bf16 %v607_v47, %v600_v46 }
   0xe   :  { %1151 = vmatpush3.bf16.msra.mxu0 %v1150_v34  ;;  %1044 = vmatmul.mubr.f32.vlgmr.msra.gmra.mrb[0].mxu1 %v96_v35 }
   0xf   :  { %1152 = vmatprep.subr.bf16.mxu0 %v1223_v0  ;;  %1105 = vmatprep.mubr.msk.f32.mxu1 %vm1224_vm1, %v1225_v4  ;;  %v609_v51 = vsub.f32 %v607_v47, %v608_v49  ;;  %v603_v52 = vand.u32 4294901760, %v602_v50  ;;  %v1192_v56 = vpack.c.bf16 %v608_v49, %v601_v48 }
  0x10   :  { %1181 = vmatpush3.bf16.msra.mxu1 %v1180_v45 }
  0x11   :  { %1182 = vmatprep.subr.bf16.mxu1 %v1223_v0  ;;  %v610_v53 = vand.u32 4294901760, %v609_v51 }
  0x12   :  { %1154 = vmatpush3.bf16.msra.mxu0 %v1153_v36 }
  0x13   :  { %1155 = vmatprep.subr.bf16.mxu0 %v1223_v0  ;;  %v1183_v54 = vpack.c.bf16 %v610_v53, %v603_v52 }
  0x15   :  { %1055 = vmatmul.mubr.f32.vlgmr.msra.gmra.mrb[0].mxu0 %v92_v16 }
  0x16   :  { %1157 = vmatpush3.bf16.msra.mxu0 %v1156_v37  ;;  %1065 = vmatprep.mubr.msk.f32.mxu0 %vm1224_vm1, %v1225_v4 }
  0x17   :  { %1158 = vmatprep.subr.bf16.mxu0 %v1223_v0 }
  0x1a   :  { %1160 = vmatpush3.bf16.msra.mxu0 %v1159_v38 }
  0x1b   :  { %1161 = vmatprep.subr.bf16.mxu0 %v1223_v0 }
  0x1d   :  { %1066 = vmatmul.mubr.f32.vlgmr.msra.gmra.mrb[0].mxu0 %v93_v22 }
  0x1e   :  { %1163 = vmatpush3.bf16.msra.mxu0 %v1144_v17  ;;  %1076 = vmatprep.mubr.msk.f32.mxu0 %vm1224_vm1, %v1225_v4 }
  0x1f   :  { %1164 = vmatprep.subr.bf16.mxu0 %v1223_v0 }
  0x22   :  { %1166 = vmatpush3.bf16.msra.mxu0 %v1147_v27 }
  0x23   :  { %1167 = vmatprep.subr.bf16.mxu0 %v1223_v0 }
  0x25   :  { %1077 = vmatmul.mubr.f32.vlgmr.msra.gmra.mrb[0].mxu0 %v94_v28 }
  0x26   :  { %1169 = vmatpush3.bf16.msra.mxu0 %v1168_v39  ;;  %1087 = vmatprep.mubr.msk.f32.mxu0 %vm1224_vm1, %v1225_v4 }
  0x27   :  { %1170 = vmatprep.subr.bf16.mxu0 %v1223_v0 }
  0x2a   :  { %1172 = vmatpush3.bf16.msra.mxu0 %v1171_v40 }
  0x2b   :  { %1173 = vmatprep.subr.bf16.mxu0 %v1223_v0 }
  0x2d   :  { %1088 = vmatmul.mubr.f32.vlgmr.msra.gmra.mrb[0].mxu0 %v92_v16 }
  0x2e   :  { %1175 = vmatpush3.bf16.msra.mxu0 %v1144_v17  ;;  %1098 = vmatprep.mubr.msk.f32.mxu0 %vm1224_vm1, %v1225_v4 }
  0x2f   :  { %1176 = vmatprep.subr.bf16.mxu0 %v1223_v0 }
  0x32   :  { %1178 = vmatpush3.bf16.msra.mxu0 %v1147_v27 }
  0x35   :  { %1099 = vmatmul.mubr.f32.vlgmr.msra.gmra.mrb[0].mxu0 %v92_v16 }
  0xe1   :  { %v98_v57 = vpop.f32.mrb[0].mxu1 }
  0xe2   :  { %v1045_v58 = vpop.f32.mrb[1].mxu1 }
 0x108   :  { %v504_v59 = vpop.f32.mrb[0].mxu0 }
 0x109   :  { %v1197_v60 = vadd.f32 %v504_v59, %v98_v57  ;;  %v1100_v61 = vpop.f32.mrb[1].mxu0 }
 0x10b   :  { %v986_v62 = vmul.f32 -1.442695, %v1197_v60 }
 0x10d   :  { %1219 = vpow2.f32 %v986_v62 }
 0x117   :  { %v1220_v63 = vpop.eup %1219 }
 0x118   :  { %v511_v1 = vadd.f32 1.0, %v1220_v63 }
 0x11a   :  { %1221 = vrcp.f32 %v511_v1 }
 0x124   :  { %v1222_v2 = vpop.eup %1221 }
 0x125   :  { %v514_v3 = vmul.f32 %v1222_v2, %v1197_v60 }
 0x127   :  { %v519_v5 = vsel %vm517_vm2, %v514_v3, 0 }
 0x128   :  { %v588_v6 = vand.u32 4294901760, %v519_v5 }
 0x12a   :  { %v589_v7 = vsub.f32 %v519_v5, %v588_v6 }
 0x12c   :  { %v590_v8 = vand.u32 4294901760, %v589_v7 }
 0x12e   :  { %v591_v9 = vsub.f32 %v589_v7, %v590_v8 }
 0x130   :  { %v592_v10 = vand.u32 4294901760, %v591_v9 }
 0x132   :  { %1106 = vmatmul.mubr.f32.vlgmr.msra.gmra.mrb[2].mxu1 %v592_v10 }
 0x133   :  { %1184 = vmatpush3.bf16.msra.mxu1 %v1183_v54  ;;  %1112 = vmatprep.mubr.msk.f32.mxu1 %vm1224_vm1, %v1225_v4 }
 0x134   :  { %1185 = vmatprep.subr.bf16.mxu1 %v1223_v0 }
 0x13a   :  { %1113 = vmatmul.mubr.f32.vlgmr.msra.gmra.mrb[2].mxu1 %v588_v6 }
 0x13b   :  { %1187 = vmatpush3.bf16.msra.mxu1 %v1186_v55  ;;  %1119 = vmatprep.mubr.msk.f32.mxu1 %vm1224_vm1, %v1225_v4 }
 0x13c   :  { %1188 = vmatprep.subr.bf16.mxu1 %v1223_v0 }
 0x142   :  { %1120 = vmatmul.mubr.f32.vlgmr.msra.gmra.mrb[2].mxu1 %v589_v7 }
 0x143   :  { %1190 = vmatpush3.bf16.msra.mxu1 %v1180_v45  ;;  %1126 = vmatprep.mubr.msk.f32.mxu1 %vm1224_vm1, %v1225_v4 }
 0x144   :  { %1191 = vmatprep.subr.bf16.mxu1 %v1223_v0 }
 0x14a   :  { %1127 = vmatmul.mubr.f32.vlgmr.msra.gmra.mrb[2].mxu1 %v590_v8 }
 0x14b   :  { %1193 = vmatpush3.bf16.msra.mxu1 %v1192_v56  ;;  %1133 = vmatprep.mubr.msk.f32.mxu1 %vm1224_vm1, %v1225_v4 }
 0x14c   :  { %1194 = vmatprep.subr.bf16.mxu1 %v1223_v0 }
 0x152   :  { %1134 = vmatmul.mubr.f32.vlgmr.msra.gmra.mrb[2].mxu1 %v588_v6 }
 0x153   :  { %1196 = vmatpush3.bf16.msra.mxu1 %v1180_v45  ;;  %1140 = vmatprep.mubr.msk.f32.mxu1 %vm1224_vm1, %v1225_v4 }
 0x15a   :  { %1141 = vmatmul.mubr.f32.vlgmr.msra.gmra.mrb[2].mxu1 %v588_v6 }
 0x22d   :  { %v976_v11 = vpop.f32.mrb[2].mxu1 }
 0x22e   :  { %981 = vst.msk [vmem:[%s1316_s3] sm:$0xff] %vm980_vm3, %v976_v11  ;;  %v1142_v12 = vpop.f32.mrb[3].mxu1 }

</bundles_post_ra>
